<compile_context>
chip_gen: v6e
topology: v6e:2x2x1
jax: 0.10.0
libtpu: 0.0.40
codegen_flags: <defaults>
</compile_context>

<pallas_src>
import jax
import jax.numpy as jnp
from jax.experimental import pallas as pl
from jax.experimental.pallas import tpu as pltpu

_LANE = 128
_NEG = -1e30  # additive mask value for invalid conv time rows


def _round_up(x, m):
    return (x + m - 1) // m * m


def _cdiv(a, b):
    return (a + b - 1) // b


def _make_cnn_text_kernel(Kmax, TB, T_pad, D, CO_pad, C_pad):
    """Packed conv (Kmax shifted partial matmuls) -> masked max-pool-over-time
    -> bias + ReLU -> FC, for one batch tile."""

    def kernel(emb_ref, w_ref, b_ref, mask_ref, fw_ref, fcb_ref, out_ref):
        emb = emb_ref[...]                                  # [TB, L_emb, D] bf16
        conv = None
        for k in range(Kmax):                               # static unroll, Kmax small
            # Sublane-shifted view, no lane-axis concat (cheap for D << 128).
            xk = emb[:, k:k + T_pad, :].reshape(TB * T_pad, D)
            wk = w_ref[k * D:(k + 1) * D, :]                # [D, CO_pad] bf16
            part = jnp.dot(xk, wk, preferred_element_type=jnp.float32)
            conv = part if conv is None else conv + part    # [TB*T_pad, CO_pad] f32
        # T_pad is a multiple of 16 -> tiling-preserving reshape.
        conv = conv.reshape(TB, T_pad, CO_pad) + mask_ref[...][None, :, :]
        pooled = jnp.max(conv, axis=1)                      # [TB, CO_pad] f32
        # max-then-(bias,ReLU) == (bias,ReLU)-then-max (bias const in t, ReLU monotone).
        pooled = jnp.maximum(pooled + b_ref[...], 0.0)
        # TODO(synk): dropout / dropout_embed are identity at inference.
        out_ref[...] = (jnp.dot(pooled, fw_ref[...],
                                preferred_element_type=jnp.float32)
                        + fcb_ref[...]).astype(out_ref.dtype)

    return kernel


def cnn_text_forward(token_ids, embed_table, conv_ws, conv_bs, fc_w, fc_b, Ks,
                     *, block_b=None, vmem_budget_bytes=32 * 1024 * 1024,
                     vmem_limit_bytes=None):
    """token_ids: int32 [B, L]. conv_ws[i]: [K_i, D, Co]. fc_w: [len(Ks)*Co, C].
    Returns logits [B, C] float32."""
    Ks = tuple(int(k) for k in Ks)
    nK = len(Ks)
    B, L = token_ids.shape
    V, D = embed_table.shape
    Co = conv_ws[0].shape[-1]
    C = fc_w.shape[-1]
    Kmax = max(Ks)
    assert L >= Kmax, "narrow conv requires L >= max kernel size"

    CO = nK * Co
    CO_pad = _round_up(CO, _LANE)
    C_pad = _round_up(C, _LANE)
    T = L - min(Ks) + 1                    # longest valid conv length among filters
    T_pad = _round_up(T, 16)               # keep bf16/f32 sublane tiling on reshape
    L_emb = T_pad + Kmax - 1               # padded time so every shift stays in-bounds

    # Embedding lookup (gather) in bf16 -> half the HBM round trip of f32.
    # TODO(synk): fully fuse the gather into the kernel (scalar-prefetch token
    # ids + embed_table as an HBM ref + DMA row gather) to drop the round trip.
    emb = jnp.take(embed_table.astype(jnp.bfloat16), token_ids, axis=0)  # [B, L, D]
    emb = jnp.pad(emb, ((0, 0), (0, L_emb - L), (0, 0)))

    # ---- batch tile size TB from a VMEM budget (v7x-safe) ------------------
    D_lane = _round_up(D, _LANE)           # VMEM lane padding when D < 128
    per_row = (2 * 2 * L_emb * D_lane      # double-buffered bf16 emb tile
               + 4 * T_pad * CO_pad        # f32 conv accumulator
               + 2 * 2 * T_pad * D_lane    # bf16 shifted-slice temporaries
               + 2 * 4 * C_pad)            # double-buffered f32 logits tile
    fixed = 2 * (2 * Kmax * D * CO_pad     # bf16 packed conv weight
                 + 4 * T_pad * CO_pad      # f32 pool mask
                 + 4 * CO_pad              # bias
                 + 4 * CO_pad * C_pad      # f32 FC weight
                 + 4 * C_pad)              # FC bias
    if block_b is None:
        block_b = max(8, min(512, (vmem_budget_bytes - fixed) // per_row))
    TB = _round_up(min(int(block_b), max(B, 1)), 8)
    if _round_up(B, 8) >= 16:              # keep >= 2 grid steps (v7x: 2 TCs)
        TB = min(TB, _round_up(_cdiv(_round_up(B, 8), 2), 8))
    TB = max(8, TB)
    B_pad = _round_up(B, TB)
    if B_pad != B:
        emb = jnp.pad(emb, ((0, B_pad - B), (0, 0), (0, 0)))
    grid = (B_pad // TB,)

    # ---- pack all filter sizes into one weight / bias / mask / FC ----------
    w_pack = jnp.zeros((Kmax * D, CO_pad), jnp.float32)
    mask = jnp.zeros((T_pad, CO_pad), jnp.float32)
    for idx, K in enumerate(Ks):
        w = conv_ws[idx].reshape(K * D, Co).astype(jnp.float32)
        w_pack = w_pack.at[:K * D, idx * Co:(idx + 1) * Co].set(w)
        Tk = L - K + 1                     # valid conv length for this filter
        if Tk < T_pad:
            mask = mask.at[Tk:, idx * Co:(idx + 1) * Co].set(_NEG)
    w_pack = w_pack.astype(jnp.bfloat16)
    b_pack = jnp.pad(jnp.concatenate([b.reshape(-1) for b in conv_bs])
                     .astype(jnp.float32), (0, CO_pad - CO)).reshape(1, CO_pad)
    fw = jnp.pad(fc_w.astype(jnp.float32), ((0, CO_pad - CO), (0, C_pad - C)))
    fcb = jnp.pad(fc_b.astype(jnp.float32), (0, C_pad - C)).reshape(1, C_pad)

    # Weight/bias/mask blocks are grid-invariant (constant index_map); they are
    # small, so default double-buffering is accepted instead of Buffered(1).
    in_specs = [
        pl.BlockSpec((TB, L_emb, D), lambda i: (i, 0, 0)),
        pl.BlockSpec((Kmax * D, CO_pad), lambda i: (0, 0)),
        pl.BlockSpec((1, CO_pad), lambda i: (0, 0)),
        pl.BlockSpec((T_pad, CO_pad), lambda i: (0, 0)),
        pl.BlockSpec((CO_pad, C_pad), lambda i: (0, 0)),
        pl.BlockSpec((1, C_pad), lambda i: (0, 0)),
    ]

    if vmem_limit_bytes is None:
        est = fixed + TB * per_row
        vmem_limit_bytes = int(min(max(2 * est, 32 * 1024 * 1024),
                                   48 * 1024 * 1024))

    kernel = _make_cnn_text_kernel(Kmax, TB, T_pad, D, CO_pad, C_pad)
    out = pl.pallas_call(
        kernel,
        out_shape=jax.ShapeDtypeStruct((B_pad, C_pad), jnp.float32),
        grid=grid,
        in_specs=in_specs,
        out_specs=pl.BlockSpec((TB, C_pad), lambda i: (i, 0)),
        compiler_params=pltpu.CompilerParams(
            dimension_semantics=("parallel",),
            vmem_limit_bytes=vmem_limit_bytes),
    )(emb, w_pack, b_pack, mask, fw, fcb)
    return out[:B, :C]


def _reference_forward(token_ids, embed_table, conv_ws, conv_bs, fc_w, fc_b, Ks):
    """Pure-JAX f32 reference mirroring the PyTorch forward (eval mode)."""
    emb = jnp.take(embed_table, token_ids, axis=0)             # [B, L, D]
    B, L, D = emb.shape
    feats = []
    for (K, w, b) in zip(Ks, conv_ws, conv_bs):
        T = L - K + 1
        acc = jnp.zeros((B, T, w.shape[-1]), jnp.float32)
        for k in range(K):
            acc = acc + jnp.einsum('btd,dc->btc', emb[:, k:k + T, :], w[k])
        acc = jnp.maximum(acc + b[None, None, :], 0.0)
        feats.append(jnp.max(acc, axis=1))
    feat = jnp.concatenate(feats, axis=1)
    return feat @ fc_w + fc_b[None, :]


if __name__ == "__main__":
    # Small, deterministic config consistent with the module's __init__:
    V = 50           # args.embed_num
    D = 32           # args.embed_dim
    C = 4            # args.class_num
    Co = 8           # args.kernel_num
    Ks = (3, 4, 5)   # args.kernel_sizes
    B, L = 2, 16     # batch, sequence length
    padding_id = 1   # args.paddingId

    key = jax.random.PRNGKey(0)
    keys = jax.random.split(key, 4 + 2 * len(Ks))
    k_emb, k_ids, k_fc_w, k_fc_b = keys[:4]
    k_convs = keys[4:]

    # Embedding table (padding row zeroed, as nn.Embedding(padding_idx=...) does).
    embed_table = 0.1 * jax.random.normal(k_emb, (V, D), jnp.float32)
    embed_table = embed_table.at[padding_id].set(0.0)

    # Conv weights/biases: PyTorch Conv2d(Ci=1, Co, (K, D)) -> stored [K, D, Co].
    conv_ws, conv_bs = [], []
    for i, K in enumerate(Ks):
        kw, kb = k_convs[2 * i], k_convs[2 * i + 1]
        fan_in = K * D
        bound = 1.0 / (fan_in ** 0.5)
        conv_ws.append(jax.random.uniform(kw, (K, D, Co), jnp.float32, -bound, bound))
        conv_bs.append(jax.random.uniform(kb, (Co,), jnp.float32, -bound, bound))

    # FC: PyTorch Linear(len(Ks)*Co, C) -> stored [in_fea, C].
    in_fea = len(Ks) * Co
    bound = 1.0 / (in_fea ** 0.5)
    fc_w = jax.random.uniform(k_fc_w, (in_fea, C), jnp.float32, -bound, bound)
    fc_b = jax.random.uniform(k_fc_b, (C,), jnp.float32, -bound, bound)

    # Token ids (include some padding tokens).
    token_ids = jax.random.randint(k_ids, (B, L), 0, V, jnp.int32)
    token_ids = token_ids.at[:, -2:].set(padding_id)

    logits = cnn_text_forward(token_ids, embed_table, conv_ws, conv_bs,
                              fc_w, fc_b, Ks)
    logits = jax.block_until_ready(logits)

    ref = _reference_forward(token_ids, embed_table, conv_ws, conv_bs,
                             fc_w, fc_b, Ks)
    assert logits.shape == (B, C)
    # bf16 activations/weights with f32 accumulation -> loose-ish tolerance.
    assert jnp.allclose(logits, ref, rtol=2e-2, atol=2e-2), (logits, ref)

    print("KERNEL_OK")
</pallas_src>

<mosaic_0001>
module attributes {stable_mosaic.version = 11 : i64} {
  func.func @kernel(%arg0: i32, %arg1: memref<8x20x32xbf16, #tpu.memory_space<vmem>>, %arg2: memref<160x128xbf16, #tpu.memory_space<vmem>>, %arg3: memref<1x128xf32, #tpu.memory_space<vmem>>, %arg4: memref<16x128xf32, #tpu.memory_space<vmem>>, %arg5: memref<128x128xf32, #tpu.memory_space<vmem>>, %arg6: memref<1x128xf32, #tpu.memory_space<vmem>>, %arg7: memref<8x128xf32, #tpu.memory_space<vmem>>) attributes {dimension_semantics = [#tpu.dimension_semantics<parallel>], iteration_bounds = array<i64: 1>, scalar_prefetch = 0 : i64, scratch_operands = 0 : i64, tpu.core_type = #tpu.core_type<tc>, window_params = [{transform_indices = @transform_0, window_bounds = array<i64: 8, 20, 32>}, {pipeline_mode = #tpu.pipeline_mode<synchronous>, transform_indices = @transform_1, window_bounds = array<i64: 160, 128>}, {pipeline_mode = #tpu.pipeline_mode<synchronous>, transform_indices = @transform_2, window_bounds = array<i64: 1, 128>}, {pipeline_mode = #tpu.pipeline_mode<synchronous>, transform_indices = @transform_3, window_bounds = array<i64: 16, 128>}, {pipeline_mode = #tpu.pipeline_mode<synchronous>, transform_indices = @transform_4, window_bounds = array<i64: 128, 128>}, {pipeline_mode = #tpu.pipeline_mode<synchronous>, transform_indices = @transform_5, window_bounds = array<i64: 1, 128>}, {transform_indices = @transform_6, window_bounds = array<i64: 8, 128>}]} {
    %c0 = arith.constant 0 : index
    %c0_0 = arith.constant 0 : index
    %c0_1 = arith.constant 0 : index
    %0 = vector.load %arg1[%c0, %c0_0, %c0_1] : memref<8x20x32xbf16, #tpu.memory_space<vmem>>, vector<8x20x32xbf16>
    %1 = vector.extract_strided_slice %0 {offsets = [0, 0, 0], sizes = [8, 16, 32], strides = [1, 1, 1]} : vector<8x20x32xbf16> to vector<8x16x32xbf16>
    %2 = vector.shape_cast %1 : vector<8x16x32xbf16> to vector<128x32xbf16>
    %c0_2 = arith.constant 0 : index
    %c0_3 = arith.constant 0 : index
    %3 = vector.load %arg2[%c0_2, %c0_3] : memref<160x128xbf16, #tpu.memory_space<vmem>>, vector<32x128xbf16>
    %cst = arith.constant dense<0.000000e+00> : vector<128x128xf32>
    %4 = tpu.matmul %2, %3, %cst {dimension_numbers = #tpu.dot_dimension_numbers<[1], [0], [0], [1], [0, 0, 1, 1], [], []>} : vector<128x32xbf16>, vector<32x128xbf16>, vector<128x128xf32> -> vector<128x128xf32>
    %5 = vector.extract_strided_slice %0 {offsets = [0, 1, 0], sizes = [8, 16, 32], strides = [1, 1, 1]} : vector<8x20x32xbf16> to vector<8x16x32xbf16>
    %6 = vector.shape_cast %5 : vector<8x16x32xbf16> to vector<128x32xbf16>
    %c32 = arith.constant 32 : index
    %c0_4 = arith.constant 0 : index
    %7 = vector.load %arg2[%c32, %c0_4] : memref<160x128xbf16, #tpu.memory_space<vmem>>, vector<32x128xbf16>
    %cst_5 = arith.constant dense<0.000000e+00> : vector<128x128xf32>
    %8 = tpu.matmul %6, %7, %cst_5 {dimension_numbers = #tpu.dot_dimension_numbers<[1], [0], [0], [1], [0, 0, 1, 1], [], []>} : vector<128x32xbf16>, vector<32x128xbf16>, vector<128x128xf32> -> vector<128x128xf32>
    %9 = arith.addf %4, %8 : vector<128x128xf32>
    %10 = vector.extract_strided_slice %0 {offsets = [0, 2, 0], sizes = [8, 16, 32], strides = [1, 1, 1]} : vector<8x20x32xbf16> to vector<8x16x32xbf16>
    %11 = vector.shape_cast %10 : vector<8x16x32xbf16> to vector<128x32xbf16>
    %c64 = arith.constant 64 : index
    %c0_6 = arith.constant 0 : index
    %12 = vector.load %arg2[%c64, %c0_6] : memref<160x128xbf16, #tpu.memory_space<vmem>>, vector<32x128xbf16>
    %cst_7 = arith.constant dense<0.000000e+00> : vector<128x128xf32>
    %13 = tpu.matmul %11, %12, %cst_7 {dimension_numbers = #tpu.dot_dimension_numbers<[1], [0], [0], [1], [0, 0, 1, 1], [], []>} : vector<128x32xbf16>, vector<32x128xbf16>, vector<128x128xf32> -> vector<128x128xf32>
    %14 = arith.addf %9, %13 : vector<128x128xf32>
    %15 = vector.extract_strided_slice %0 {offsets = [0, 3, 0], sizes = [8, 16, 32], strides = [1, 1, 1]} : vector<8x20x32xbf16> to vector<8x16x32xbf16>
    %16 = vector.shape_cast %15 : vector<8x16x32xbf16> to vector<128x32xbf16>
    %c96 = arith.constant 96 : index
    %c0_8 = arith.constant 0 : index
    %17 = vector.load %arg2[%c96, %c0_8] : memref<160x128xbf16, #tpu.memory_space<vmem>>, vector<32x128xbf16>
    %cst_9 = arith.constant dense<0.000000e+00> : vector<128x128xf32>
    %18 = tpu.matmul %16, %17, %cst_9 {dimension_numbers = #tpu.dot_dimension_numbers<[1], [0], [0], [1], [0, 0, 1, 1], [], []>} : vector<128x32xbf16>, vector<32x128xbf16>, vector<128x128xf32> -> vector<128x128xf32>
    %19 = arith.addf %14, %18 : vector<128x128xf32>
    %20 = vector.extract_strided_slice %0 {offsets = [0, 4, 0], sizes = [8, 16, 32], strides = [1, 1, 1]} : vector<8x20x32xbf16> to vector<8x16x32xbf16>
    %21 = vector.shape_cast %20 : vector<8x16x32xbf16> to vector<128x32xbf16>
    %c128 = arith.constant 128 : index
    %c0_10 = arith.constant 0 : index
    %22 = vector.load %arg2[%c128, %c0_10] : memref<160x128xbf16, #tpu.memory_space<vmem>>, vector<32x128xbf16>
    %cst_11 = arith.constant dense<0.000000e+00> : vector<128x128xf32>
    %23 = tpu.matmul %21, %22, %cst_11 {dimension_numbers = #tpu.dot_dimension_numbers<[1], [0], [0], [1], [0, 0, 1, 1], [], []>} : vector<128x32xbf16>, vector<32x128xbf16>, vector<128x128xf32> -> vector<128x128xf32>
    %24 = arith.addf %19, %23 : vector<128x128xf32>
    %25 = vector.shape_cast %24 : vector<128x128xf32> to vector<8x16x128xf32>
    %c0_12 = arith.constant 0 : index
    %c0_13 = arith.constant 0 : index
    %26 = vector.load %arg4[%c0_12, %c0_13] : memref<16x128xf32, #tpu.memory_space<vmem>>, vector<16x128xf32>
    %27 = vector.shape_cast %26 : vector<16x128xf32> to vector<1x16x128xf32>
    %28 = vector.broadcast %27 : vector<1x16x128xf32> to vector<8x16x128xf32>
    %29 = arith.addf %25, %28 : vector<8x16x128xf32>
    %cst_14 = arith.constant dense<0xFF800000> : vector<8x128xf32>
    %30 = vector.multi_reduction <maximumf>, %29, %cst_14 [1] : vector<8x16x128xf32> to vector<8x128xf32>
    %c0_15 = arith.constant 0 : index
    %c0_16 = arith.constant 0 : index
    %31 = vector.load %arg3[%c0_15, %c0_16] : memref<1x128xf32, #tpu.memory_space<vmem>>, vector<1x128xf32>
    %32 = vector.broadcast %31 : vector<1x128xf32> to vector<8x128xf32>
    %33 = arith.addf %30, %32 : vector<8x128xf32>
    %cst_17 = arith.constant 0.000000e+00 : f32
    %34 = vector.broadcast %cst_17 : f32 to vector<8x128xf32>
    %35 = arith.maximumf %33, %34 : vector<8x128xf32>
    %c0_18 = arith.constant 0 : index
    %c0_19 = arith.constant 0 : index
    %36 = vector.load %arg5[%c0_18, %c0_19] : memref<128x128xf32, #tpu.memory_space<vmem>>, vector<128x128xf32>
    %cst_20 = arith.constant dense<0.000000e+00> : vector<8x128xf32>
    %37 = tpu.matmul %35, %36, %cst_20 {dimension_numbers = #tpu.dot_dimension_numbers<[1], [0], [0], [1], [0, 0, 1, 1], [], []>} : vector<8x128xf32>, vector<128x128xf32>, vector<8x128xf32> -> vector<8x128xf32>
    %c0_21 = arith.constant 0 : index
    %c0_22 = arith.constant 0 : index
    %38 = vector.load %arg6[%c0_21, %c0_22] : memref<1x128xf32, #tpu.memory_space<vmem>>, vector<1x128xf32>
    %39 = vector.broadcast %38 : vector<1x128xf32> to vector<8x128xf32>
    %40 = arith.addf %37, %39 : vector<8x128xf32>
    %c0_23 = arith.constant 0 : index
    %c0_24 = arith.constant 0 : index
    %41 = vector.load %arg7[%c0_23, %c0_24] : memref<8x128xf32, #tpu.memory_space<vmem>>, vector<8x128xf32>
    tpu.vector_store %arg7[%c0_23, %c0_24], %40 {strides = array<i32>} : memref<8x128xf32, #tpu.memory_space<vmem>>, vector<8x128xf32>,
    return
  }
  func.func @transform_0(%arg0: i32) -> (i32, i32, i32) {
    %c0_i32 = arith.constant 0 : i32
    %c0_i32_0 = arith.constant 0 : i32
    %c0_i32_1 = arith.constant 0 : i32
    return %arg0, %c0_i32, %c0_i32_0 : i32, i32, i32
  }
  func.func @transform_1(%arg0: i32) -> (i32, i32) {
    %c0_i32 = arith.constant 0 : i32
    %c0_i32_0 = arith.constant 0 : i32
    %c0_i32_1 = arith.constant 0 : i32
    return %c0_i32, %c0_i32_0 : i32, i32
  }
  func.func @transform_2(%arg0: i32) -> (i32, i32) {
    %c0_i32 = arith.constant 0 : i32
    %c0_i32_0 = arith.constant 0 : i32
    %c0_i32_1 = arith.constant 0 : i32
    return %c0_i32, %c0_i32_0 : i32, i32
  }
  func.func @transform_3(%arg0: i32) -> (i32, i32) {
    %c0_i32 = arith.constant 0 : i32
    %c0_i32_0 = arith.constant 0 : i32
    %c0_i32_1 = arith.constant 0 : i32
    return %c0_i32, %c0_i32_0 : i32, i32
  }
  func.func @transform_4(%arg0: i32) -> (i32, i32) {
    %c0_i32 = arith.constant 0 : i32
    %c0_i32_0 = arith.constant 0 : i32
    %c0_i32_1 = arith.constant 0 : i32
    return %c0_i32, %c0_i32_0 : i32, i32
  }
  func.func @transform_5(%arg0: i32) -> (i32, i32) {
    %c0_i32 = arith.constant 0 : i32
    %c0_i32_0 = arith.constant 0 : i32
    %c0_i32_1 = arith.constant 0 : i32
    return %c0_i32, %c0_i32_0 : i32, i32
  }
  func.func @transform_6(%arg0: i32) -> (i32, i32) {
    %c0_i32 = arith.constant 0 : i32
    %c0_i32_0 = arith.constant 0 : i32
    return %arg0, %c0_i32 : i32, i32
  }
}

</mosaic_0001>

<bundles_post_ra>
// kernel: tpu_custom_call.1
= control target key start
LH: loop header
LB: loop body
LE: loop exit
PB: predicated region body
PF: predicated region fallthrough
CT: control target
= control target key end

     0   :  { %11 = vsyncpa [#allocation3], 0  ;;  %s2849_s0 = inlined_call_operand.vmem [shape: bf16[8,20,32], index: 0, kind: input, shape index: {}]   ;;  %s2850_s1 = inlined_call_operand.hbm [shape: bf16[160,128], index: 1, kind: input, shape index: {}]   ;;  %s2851_s2 = inlined_call_operand.vmem [shape: f32[1,128], index: 2, kind: input, shape index: {}]   ;;  %s2852_s3 = inlined_call_operand.vmem [shape: f32[16,128], index: 3, kind: input, shape index: {}]   ;;  %s2853_s4 = inlined_call_operand.vmem [shape: f32[128,128], index: 4, kind: input, shape index: {}]   ;;  %s2854_s5 = inlined_call_operand.vmem [shape: f32[1,128], index: 5, kind: input, shape index: {}]   ;;  %s2855_s6 = inlined_call_operand.hbm [shape: f32[8,128], index: 6, kind: output, shape index: {}]  }
   0x1   :  { %12 = vsyncpa [#allocation4], 0  ;;  %s1995_s21 = smov [#allocation2]  }
   0x2   :  { %s20_s22 = sshll.u32 %s1995_s21, 4  ;;  %s21_s22 = int_to_ptr.vmem [resolvable:$true] %s20_s22 }
   0x3   :  { %s1959_s23 = scalar_lea.vmem %s21_s22, 1280  ;;  %p1964_p1 = scmp.lt.s32.totalorder %s21_s22, %s21_s22 }
   0x4   :  { %p1960_p0 = scmp.ne.s32.totalorder %s21_s22, %s1959_s23  ;;  %p1965_p2 = scmp.lt.s32.totalorder %s1959_s23, %s1959_s23 }
   0x6   :  { %p1966_p3 = por %p1965_p2, %p1964_p1 }
   0x8   :  { %p1967_p4 = pnand %p1966_p3, %p1960_p0 }
   0xa   :  { %1970 = shalt.err (!%p1967_p4)
}
   0xb   :  { %s1996_s24 = smov 64   ;;  %s1997_s25 = smov 4  }
   0xc   :  { %26 = dma.hbm_to_vmem [thread:$0]  %s2850_s1, 1280, %s21_s22, [#allocation3], %s1996_s24, %s1996_s24, %s1997_s25  }
   0xd   :  { %1991 = dma.done.wait [#allocation3], 1280  }
   0xe   :  { %1992 = vsyncadd [#allocation3], 4294966016  ;;  %vm67_vm0 = vsmask.f32 3328  ;;  %vm68_vm1 = vsmask.f32 7440 }
   0xf   :  { %v1933_v0 = vld [vmem:[#allocation2 + $0x18] sm:$0xff]   ;;  %v1934_v1 = vld [vmem:[#allocation2 + $0x10] sm:$0xff]   ;;  %v2042_v2 = vld [vmem:[%s2849_s0] sm:$0xf]  ;;  %vm302_vm2 = vcmask 261120   ;;  %vm605_vm4 = vcmask 1042432  }
  0x10   :  { %1788 = vmatprep.subr.bf16.mxu0 %v1933_v0  ;;  %1923 = vmatprep.subr.bf16.mxu1 %v1933_v0  ;;  %v2047_v3 = vld [vmem:[%s2849_s0 + $0x4] sm:$0xf]  ;;  %v2052_v4 = vld [vmem:[%s2849_s0 + $0x8] sm:$0x3]  ;;  %v71_v5 = vshrl.u32 %v2042_v2, 16  ;;  %v74_v6 = vshll.u32 %v2042_v2, 16  ;;  %vm2093_vm3 = vmor %vm67_vm0, %vm68_vm1 }
  0x11   :  { %1789 = vmatpush3.bf16.msra.mxu0 %v1933_v0  ;;  %1925 = vmatpush3.bf16.msra.mxu1 %v1933_v0  ;;  %v80_v7 = vshll.u32 %v2047_v3, 16  ;;  %v84_v8 = vshrl.u32 %v2047_v3, 16  ;;  %v2061_v9 = vld [vmem:[%s2849_s0 + $0x48] sm:$0xf]  ;;  %v90_v10 = vshll.u32 %v2052_v4, 16  ;;  %v1631_v14 = vcombine.low %v2042_v2, %v2047_v3  ;;  %s2000_s11 = smov [#allocation5]  }
  0x12   :  { %1790 = vmatprep.subr.bf16.mxu0 %v1934_v1  ;;  %1924 = vmatprep.subr.bf16.mxu1 %v1934_v1  ;;  %v2067_v11 = vld [vmem:[%s2849_s0 + $0x4c] sm:$0xf]  ;;  %v2072_v12 = vld [vmem:[%s2849_s0 + $0x50] sm:$0x3]  ;;  %v215_v13 = vshrl.u32 %v2061_v9, 16  ;;  %v73_v15 = vrot.slane %v71_v5, 4 }
  0x13   :  { %v76_v16 = vrot.slane %v74_v6, 5  ;;  %v82_v17 = vrot.slane %v80_v7, 5  ;;  %v86_v18 = vrot.slane %v84_v8, 4  ;;  %v92_v19 = vrot.slane %v90_v10, 5  ;;  %v2087_v27 = vld [vmem:[#allocation2 + $0x28] sm:$0xff]   ;;  %s1604_s12 = sshll.u32 %s2000_s11, 4  ;;  %s1605_s12 = int_to_ptr.vmem [resolvable:$true] %s1604_s12 }
  0x14   :  { %v2077_v20 = vrot.slane %v71_v5, 5  ;;  %v2079_v21 = vrot.slane %v74_v6, 6  ;;  %v2081_v22 = vrot.slane %v84_v8, 5  ;;  %v2083_v25 = vrot.slane %v80_v7, 6  ;;  %v2089_v28 = vld [vmem:[#allocation2 + $0x8] sm:$0xff]   ;;  %s1971_s13 = scalar_lea.vmem %s1605_s12, 128  ;;  %p1976_p6 = scmp.lt.s32.totalorder %s1605_s12, %s1605_s12 }
  0x15   :  { %1791 = vmatpush3.bf16.msra.mxu0 %v1934_v1  ;;  %1926 = vmatpush3.bf16.msra.mxu1 %v1934_v1  ;;  %v77_v23 = vor.u32 %v76_v16, %v73_v15  ;;  %v87_v24 = vor.u32 %v86_v18, %v82_v17  ;;  %v2085_v26 = vrot.slane %v90_v10, 6  ;;  %v217_v30 = vrot.slane %v215_v13, 4  ;;  %v2107_v38 = vld [vmem:[%s2849_s0 + $0xc] sm:$0xf]  ;;  %v2115_v43 = vld [vmem:[%s2849_s0 + $0x10] sm:$0xf]  ;;  %p1972_p5 = scmp.ne.s32.totalorder %s1605_s12, %s1971_s13  ;;  %p1977_p7 = scmp.lt.s32.totalorder %s1971_s13, %s1971_s13 }
  0x16   :  { %v218_v31 = vshll.u32 %v2061_v9, 16  ;;  %v224_v32 = vshll.u32 %v2067_v11, 16  ;;  %v228_v33 = vshrl.u32 %v2067_v11, 16  ;;  %v234_v36 = vshll.u32 %v2072_v12, 16  ;;  %1828 = vmatprep.subr.bf16.mxu0 %v2087_v27  ;;  %1808 = vmatprep.subr.bf16.mxu1 %v2089_v28  ;;  %v2126_v48 = vld [vmem:[%s2849_s0 + $0x14] sm:$0x3] }
  0x17   :  { %v78_v34 = vrot.slane %v77_v23, 4  ;;  %v88_v35 = vrot.slane %v87_v24, 4  ;;  %v2101_v37 = vrot.slane %v215_v13, 5  ;;  %v95_v54 = vshrl.u32 %v2107_v38, 16  ;;  %v2145_v8 = vld [vmem:[%s2849_s0 + $0x54] sm:$0xf]  ;;  %p1978_p8 = por %p1977_p7, %p1976_p6 }
  0x18   :  { %v220_v39 = vrot.slane %v218_v31, 5  ;;  %v226_v40 = vrot.slane %v224_v32, 5  ;;  %v230_v41 = vrot.slane %v228_v33, 4  ;;  %v2110_v42 = vrot.slane %v218_v31, 6 }
  0x19   :  { %v83_v44 = vsel %vm2093_vm3, %v78_v34, %v82_v17  ;;  %v93_v45 = vsel %vm2093_vm3, %v88_v35, %v92_v19  ;;  %v236_v46 = vrot.slane %v234_v36, 5  ;;  %v2121_v47 = vrot.slane %v228_v33, 5  ;;  %v2150_v17 = vld [vmem:[%s2849_s0 + $0x58] sm:$0xf]  ;;  %p1979_p9 = pnand %p1978_p8, %p1972_p5 }
  0x1a   :  { %v1613_v49 = vcombine.low %v83_v44, %v93_v45  ;;  %v221_v50 = vor.u32 %v220_v39, %v217_v30  ;;  %v231_v51 = vor.u32 %v230_v41, %v226_v40  ;;  %v2128_v52 = vrot.slane %v224_v32, 6  ;;  %v2158_v30 = vld [vmem:[%s2849_s0 + $0x5c] sm:$0x3]  ;;  %v2166_v35 = vld [vmem:[%s2849_s0 + $0x18] sm:$0xf] }
  0x1b   :  { %v2130_v53 = vrot.slane %v234_v36, 6  ;;  %v98_v55 = vshll.u32 %v2107_v38, 16  ;;  %v104_v56 = vshll.u32 %v2115_v43, 16  ;;  %v108_v59 = vshrl.u32 %v2115_v43, 16 }
  0x1c   :  { %1792 = vmatprep.mubr.msk.bf16.mxu0 %vm302_vm2, %v1613_v49  ;;  %v222_v57 = vrot.slane %v221_v50, 4  ;;  %v232_v58 = vrot.slane %v231_v51, 4  ;;  %v114_v60 = vshll.u32 %v2126_v48, 16  ;;  %v97_v61 = vrot.slane %v95_v54, 4  ;;  %v2184_v50 = vld [vmem:[%s2849_s0 + $0x1c] sm:$0xf] }
  0x1d   :  { %v100_v62 = vrot.slane %v98_v55, 5  ;;  %v106_v63 = vrot.slane %v104_v56, 5  ;;  %v859_v0 = vrot.slane %v95_v54, 5  ;;  %v110_v6 = vrot.slane %v108_v59, 4 }
  0x1e   :  { %v227_v1 = vsel %vm2093_vm3, %v222_v57, %v226_v40  ;;  %v237_v5 = vsel %vm2093_vm3, %v232_v58, %v236_v46  ;;  %v116_v7 = vrot.slane %v114_v60, 5  ;;  %v860_v15 = vrot.slane %v98_v55, 6  ;;  %v2196_v57 = vld [vmem:[%s2849_s0 + $0x20] sm:$0x3]  ;;  %v2201_v58 = vld [vmem:[%s2849_s0 + $0x24] sm:$0xf] }
  0x1f   :  { %v1619_v10 = vcombine.low %v227_v1, %v237_v5  ;;  %v101_v13 = vor.u32 %v100_v62, %v97_v61  ;;  %v863_v16 = vrot.slane %v108_v59, 5  ;;  %v111_v18 = vor.u32 %v110_v6, %v106_v63 }
  0x20   :  { %v864_v19 = vrot.slane %v104_v56, 6  ;;  %v868_v23 = vshrl.u32 %v2126_v48, 16  ;;  %v2153_v24 = vrot.slane %v114_v60, 6  ;;  %v861_v32 = vor.u32 %v860_v15, %v859_v0  ;;  %v1940_v0 = vld [vmem:[#allocation2 + $0x20] sm:$0xff]  }
  0x21   :  { %1804 = vmatprep.mubr.msk.bf16.mxu1 %vm302_vm2, %v1619_v10  ;;  %v102_v31 = vrot.slane %v101_v13, 4  ;;  %v2860_v33 = vshrl.u32 %v2145_v8, 16  ;;  %v2859_v34 = vshll.u32 %v2145_v8, 16  ;;  %v112_v36 = vrot.slane %v111_v18, 4  ;;  %v2217_v10 = vld [vmem:[%s2849_s0 + $0x2c] sm:$0x3] }
  0x22   :  { %v2168_v39 = vor.u32 %v864_v19, %v863_v16  ;;  %v2170_v40 = vrot.slane %v868_v23, 5  ;;  %v2857_v41 = vshll.u32 %v2150_v17, 16  ;;  %v2175_v45 = vrot.slane %v861_v32, 4  ;;  %v2225_v19 = vld [vmem:[#allocation2 + $0x48] sm:$0xff]  }
  0x23   :  { %v107_v44 = vsel %vm2093_vm3, %v102_v31, %v106_v63  ;;  %v241_v46 = vrot.slane %v2860_v33, 4  ;;  %v244_v49 = vrot.slane %v2859_v34, 5  ;;  %v117_v51 = vsel %vm2093_vm3, %v112_v36, %v116_v7  ;;  %v2208_v63 = vld [vmem:[%s2849_s0 + $0x28] sm:$0xf] }
  0x24   :  { %v872_v55 = vor.u32 %v2153_v24, %v2170_v40  ;;  %v250_v56 = vrot.slane %v2857_v41, 5  ;;  %v1614_v59 = vcombine.low %v107_v44, %v117_v51  ;;  %v2858_v61 = vshrl.u32 %v2150_v17, 16  ;;  %v2246_v41 = vld [vmem:[%s2849_s0 + $0x30] sm:$0xf] }
  0x25   :  { %v245_v60 = vor.u32 %v244_v49, %v241_v46  ;;  %v2856_v62 = vshll.u32 %v2158_v30, 16  ;;  %v2870_v1 = vshrl.u32 %v2166_v35, 16  ;;  %v2869_v5 = vshll.u32 %v2166_v35, 16 }
  0x26   :  { %v2867_v6 = vshll.u32 %v2184_v50, 16  ;;  %v2868_v7 = vshrl.u32 %v2184_v50, 16  ;;  %1793 = vmatmul.mubr.msk.bf16.vlgmr.msra.gmra.mxu0 %vm302_vm2, %v1614_v59  ;;  %v254_v15 = vrot.slane %v2858_v61, 4  ;;  %v2866_v18 = vshll.u32 %v2196_v57, 16 }
  0x27   :  { %v246_v13 = vrot.slane %v245_v60, 4  ;;  %v260_v16 = vrot.slane %v2856_v62, 5  ;;  %1829 = vmatpush3.bf16.msra.mxu0 %v2087_v27  ;;  %v121_v23 = vrot.slane %v2870_v1, 4  ;;  %v124_v31 = vrot.slane %v2869_v5, 5 }
  0x28   :  { %v130_v32 = vrot.slane %v2867_v6, 5  ;;  %v134_v36 = vrot.slane %v2868_v7, 4  ;;  %v255_v46 = vor.u32 %v254_v15, %v250_v56  ;;  %v140_v49 = vrot.slane %v2866_v18, 5  ;;  %1830 = vmatprep.subr.bf16.mxu0 %v1940_v0 }
  0x29   :  { %v251_v44 = vsel %vm2093_vm3, %v246_v13, %v250_v56  ;;  %v2861_v27 = vshrl.u32 %v2201_v58, 16  ;;  %v125_v51 = vor.u32 %v124_v31, %v121_v23  ;;  %v2865_v60 = vshll.u32 %v2201_v58, 16 }
  0x2a   :  { %v135_v59 = vor.u32 %v134_v36, %v130_v32  ;;  %v2863_v62 = vshll.u32 %v2208_v63, 16  ;;  %v256_v61 = vrot.slane %v255_v46, 4  ;;  %v2864_v13 = vshrl.u32 %v2208_v63, 16 }
  0x2b   :  { %v145_v56 = vrot.slane %v2861_v27, 4  ;;  %v2862_v15 = vshll.u32 %v2217_v10, 16  ;;  %v126_v34 = vrot.slane %v125_v51, 4  ;;  %v148_v31 = vrot.slane %v2865_v60, 5  ;;  %1831 = vmatpush3.bf16.msra.mxu0 %v1940_v0  ;;  %v2272_v0 = vld [vmem:[%s2849_s0 + $0x38] sm:$0x3] }
  0x2c   :  { %v136_v23 = vrot.slane %v135_v59, 4  ;;  %v154_v36 = vrot.slane %v2863_v62, 5  ;;  %vm606_vm5 = vcmask 1046532   ;;  %v261_v46 = vsel %vm2093_vm3, %v256_v61, %v260_v16  ;;  %v2267_v59 = vld [vmem:[%s2849_s0 + $0x34] sm:$0xf]  ;;  %1868 = vmatprep.subr.bf16.mxu0 %v2225_v19  ;;  %v1937_v16 = vld [vmem:[#allocation2] sm:$0xff]  }
  0x2d   :  { %v158_v33 = vrot.slane %v2864_v13, 4  ;;  %v164_v27 = vrot.slane %v2862_v15, 5  ;;  %v1632_v51 = vcombine.low %v2107_v38, %v2115_v43  ;;  %v1620_v61 = vcombine.low %v251_v44, %v261_v46  ;;  %vm2346_vm6 = vmor %vm605_vm4, %vm606_vm5 }
  0x2e   :  { %v131_v15 = vsel %vm2093_vm3, %v126_v34, %v130_v32  ;;  %v141_v62 = vsel %vm2093_vm3, %v136_v23, %v140_v49  ;;  %v149_v13 = vor.u32 %v148_v31, %v145_v56  ;;  %v2875_v6 = vshrl.u32 %v2246_v41, 16  ;;  %v2288_v34 = vld [vmem:[%s2849_s0 + $0x3c] sm:$0xf]  ;;  %v2301_v56 = vld [vmem:[%s2849_s0 + $0x40] sm:$0xf] }
  0x2f   :  { %v1615_v60 = vcombine.low %v131_v15, %v141_v62  ;;  %v159_v18 = vor.u32 %v158_v33, %v154_v36  ;;  %v2874_v7 = vshll.u32 %v2246_v41, 16  ;;  %1805 = vmatmul.mubr.msk.bf16.vlgmr.msra.gmra.mxu1 %vm302_vm2, %v1620_v61  ;;  %v2871_v1 = vshll.u32 %v2267_v59, 16  ;;  %v2318_v15 = vld [vmem:[%s2849_s0 + $0x44] sm:$0x3]  ;;  %v1943_v23 = vld [vmem:[#allocation2 + $0x38] sm:$0xff]  }
  0x30   :  { %v150_v5 = vrot.slane %v149_v13, 4  ;;  %v2872_v44 = vshrl.u32 %v2267_v59, 16  ;;  %v2873_v46 = vshll.u32 %v2272_v0, 16  ;;  %1809 = vmatpush3.bf16.msra.mxu1 %v2089_v28  ;;  %v169_v62 = vrot.slane %v2875_v6, 4  ;;  %1812 = vmatprep.mubr.msk.bf16.mxu1 %vm302_vm2, %v1631_v14 }
  0x31   :  { %1796 = vmatprep.mubr.msk.bf16.mxu0 %vm302_vm2, %v1615_v60  ;;  %v160_v33 = vrot.slane %v159_v18, 4  ;;  %v172_v32 = vrot.slane %v2874_v7, 5  ;;  %v1633_v49 = vcombine.low %v2166_v35, %v2184_v50  ;;  %1810 = vmatprep.subr.bf16.mxu1 %v1937_v16  ;;  %v178_v18 = vrot.slane %v2871_v1, 5 }
  0x32   :  { %v155_v28 = vsel %vm2093_vm3, %v150_v5, %v154_v36  ;;  %v182_v60 = vrot.slane %v2872_v44, 4  ;;  %v188_v13 = vrot.slane %v2873_v46, 5  ;;  %v2880_v5 = vshrl.u32 %v2288_v34, 16 }
  0x33   :  { %v165_v14 = vsel %vm2093_vm3, %v160_v33, %v164_v27  ;;  %v173_v31 = vor.u32 %v172_v32, %v169_v62  ;;  %v2879_v36 = vshll.u32 %v2288_v34, 16  ;;  %v2876_v44 = vshll.u32 %v2301_v56, 16 }
  0x34   :  { %v1616_v61 = vcombine.low %v155_v28, %v165_v14  ;;  %v183_v1 = vor.u32 %v182_v60, %v178_v18  ;;  %v2877_v46 = vshrl.u32 %v2301_v56, 16  ;;  %1811 = vmatpush3.bf16.msra.mxu1 %v1937_v16  ;;  %v193_v6 = vrot.slane %v2880_v5, 4  ;;  %v1949_v28 = vld [vmem:[#allocation2 + $0x30] sm:$0xff]  }
  0x35   :  { %v174_v7 = vrot.slane %v173_v31, 4  ;;  %v196_v54 = vrot.slane %v2879_v36, 5  ;;  %v2878_v27 = vshll.u32 %v2318_v15, 16  ;;  %v202_v62 = vrot.slane %v2876_v44, 5  ;;  %1848 = vmatprep.subr.bf16.mxu1 %v1943_v23 }
  0x36   :  { %1797 = vmatmul.mubr.msk.bf16.gmra.mxu0 %vm302_vm2, %v1616_v61  ;;  %v184_v33 = vrot.slane %v183_v1, 4  ;;  %v206_v32 = vrot.slane %v2877_v46, 4  ;;  %v1634_v16 = vcombine.low %v2201_v58, %v2208_v63  ;;  %v1635_v1 = vcombine.low %v2246_v41, %v2267_v59 }
  0x37   :  { %v179_v60 = vsel %vm2093_vm3, %v174_v7, %v178_v18  ;;  %v197_v14 = vor.u32 %v196_v54, %v193_v6  ;;  %v212_v31 = vrot.slane %v2878_v27, 5  ;;  %1813 = vmatmul.mubr.msk.bf16.vlgmr.msra.gmra.mxu1 %vm302_vm2, %v1632_v51  ;;  %v1649_v54 = vrot.slane %v2042_v2, 9 }
  0x38   :  { %v189_v44 = vsel %vm2093_vm3, %v184_v33, %v188_v13  ;;  %v207_v46 = vor.u32 %v206_v32, %v202_v62  ;;  %v610_v6 = vrot.slane %v2047_v3, 5  ;;  %vm841_vm7 = vsmask.f32 2304  ;;  %1816 = vmatprep.mubr.msk.bf16.mxu1 %vm302_vm2, %v1633_v49  ;;  %1849 = vmatpush3.bf16.msra.mxu1 %v1943_v23 }
  0x39   :  { %vm842_vm8 = vsmask.f32 6416  ;;  %v1617_v7 = vcombine.low %v179_v60, %v189_v44  ;;  %v198_v18 = vrot.slane %v197_v14, 4  ;;  %v613_v27 = vrot.slane %v2052_v4, 5  ;;  %1850 = vmatprep.subr.bf16.mxu1 %v1949_v28 }
  0x3a   :  { %v208_v36 = vrot.slane %v207_v46, 4  ;;  %v611_v13 = vsel %vm2346_vm6, %v1649_v54, %v610_v6  ;;  %v612_v33 = vrot.slane %v610_v6, 4  ;;  %v1650_v32 = vrot.slane %v2107_v38, 9  ;;  %vm2412_vm9 = vmor %vm841_vm7, %vm842_vm8 }
  0x3b   :  { %1800 = vmatprep.mubr.msk.bf16.mxu0 %vm302_vm2, %v1617_v7  ;;  %v203_v44 = vsel %vm2093_vm3, %v198_v18, %v202_v62  ;;  %v617_v49 = vrot.slane %v2115_v43, 5  ;;  %v620_v23 = vrot.slane %v2126_v48, 5  ;;  %v1651_v54 = vrot.slane %v2166_v35, 9 }
  0x3c   :  { %v213_v46 = vsel %vm2093_vm3, %v208_v36, %v212_v31  ;;  %v614_v14 = vsel %vm2346_vm6, %v612_v33, %v613_v27  ;;  %v624_v6 = vrot.slane %v2184_v50, 5  ;;  %1851 = vmatpush3.bf16.msra.mxu1 %v1949_v28  ;;  %v627_v29 = vrot.slane %v2196_v57, 5 }
  0x3d   :  { %v1618_v7 = vcombine.low %v203_v44, %v213_v46  ;;  %v1657_v5 = vcombine.low %v611_v13, %v614_v14  ;;  %v618_v62 = vsel %vm2346_vm6, %v1650_v32, %v617_v49  ;;  %v619_v18 = vrot.slane %v617_v49, 4 }
  0x3e   :  { %v625_v60 = vsel %vm2346_vm6, %v1651_v54, %v624_v6  ;;  %v626_v51 = vrot.slane %v624_v6, 4  ;;  %v1638_v36 = vcombine.low %v2145_v8, %v2150_v17  ;;  %v1652_v31 = vrot.slane %v2201_v58, 9 }
  0x3f   :  { %1801 = vmatmul.mubr.msk.bf16.gmra.mxu0 %vm302_vm2, %v1618_v7  ;;  %v621_v27 = vsel %vm2346_vm6, %v619_v18, %v620_v23  ;;  %v631_v13 = vrot.slane %v2208_v63, 5  ;;  %v634_v28 = vrot.slane %v2217_v10, 5  ;;  %1817 = vmatmul.mubr.msk.bf16.gmra.mxu1 %vm302_vm2, %v1634_v16  ;;  %v1653_v44 = vrot.slane %v2246_v41, 9 }
  0x40   :  { %1832 = vmatprep.mubr.msk.bf16.mxu0 %vm302_vm2, %v1657_v5  ;;  %v1658_v33 = vcombine.low %v618_v62, %v621_v27  ;;  %v628_v32 = vsel %vm2346_vm6, %v626_v51, %v627_v29  ;;  %v638_v49 = vrot.slane %v2267_v59, 5  ;;  %1820 = vmatprep.mubr.msk.bf16.mxu1 %vm302_vm2, %v1635_v1  ;;  %v641_v16 = vrot.slane %v2272_v0, 5 }
  0x41   :  { %v1659_v23 = vcombine.low %v625_v60, %v628_v32  ;;  %v2397_v46 = vsel %vm2346_vm6, %v1652_v31, %v631_v13  ;;  %v633_v14 = vrot.slane %v631_v13, 4  ;;  %v846_v51 = vor.u32 %v2079_v21, %v2077_v20  ;;  %v1950_v32 = vld [vmem:[#allocation2 + $0x40] sm:$0xff]  }
  0x42   :  { %v2402_v5 = vsel %vm2346_vm6, %v1653_v44, %v638_v49  ;;  %v640_v54 = vrot.slane %v638_v49, 4  ;;  %v850_v6 = vor.u32 %v2083_v25, %v2081_v22  ;;  %v853_v7 = vshrl.u32 %v2052_v4, 16 }
  0x43   :  { %v635_v1 = vsel %vm2346_vm6, %v633_v14, %v634_v28  ;;  %v1654_v62 = vrot.slane %v2288_v34, 9  ;;  %v645_v18 = vrot.slane %v2301_v56, 5  ;;  %v847_v22 = vrot.slane %v846_v51, 4 }
  0x44   :  { %v1660_v20 = vcombine.low %v2397_v46, %v635_v1  ;;  %v642_v21 = vsel %vm2346_vm6, %v640_v54, %v641_v16  ;;  %v852_v25 = vrot.slane %v850_v6, 4  ;;  %v855_v27 = vrot.slane %v853_v7, 5 }
  0x45   :  { %v1661_v29 = vcombine.low %v2402_v5, %v642_v21  ;;  %v2425_v31 = vsel %vm2346_vm6, %v1654_v62, %v645_v18  ;;  %v647_v13 = vrot.slane %v645_v18, 4  ;;  %v851_v28 = vsel %vm2412_vm9, %v847_v22, %v850_v6 }
  0x46   :  { %v648_v44 = vrot.slane %v2318_v15, 5  ;;  %v866_v49 = vsel %vm2412_vm9, %v2175_v45, %v2168_v39  ;;  %v2887_v46 = vrot.slane %v2168_v39, 4  ;;  %v857_v16 = vor.u32 %v2085_v26, %v855_v27 }
  0x47   :  { %1833 = vmatmul.mubr.msk.bf16.vlgmr.msra.gmra.mxu0 %vm302_vm2, %v1658_v33  ;;  %v1655_v54 = vrot.slane %v2061_v9, 9  ;;  %v652_v51 = vrot.slane %v2067_v11, 5  ;;  %v2888_v45 = vcombine.low %v2288_v34, %v2301_v56  ;;  %v655_v39 = vrot.slane %v2072_v12, 5 }
  0x48   :  { %v873_v14 = vsel %vm2412_vm9, %v2887_v46, %v872_v55  ;;  %1869 = vmatpush3.bf16.msra.mxu0 %v2225_v19  ;;  %v2454_v24 = vsel %vm2346_vm6, %v647_v13, %v648_v44  ;;  %v2889_v26 = vshrl.u32 %v2166_v35, 16  ;;  %v2890_v55 = vshll.u32 %v2166_v35, 16  ;;  %1836 = vmatprep.mubr.msk.bf16.mxu0 %vm302_vm2, %v1659_v23 }
  0x49   :  { %v2443_v5 = vcombine.low %v866_v49, %v873_v14  ;;  %1821 = vmatmul.mubr.msk.bf16.gmra.mxu1 %vm302_vm2, %v2888_v45  ;;  %v2891_v6 = vcombine.low %v2061_v9, %v2067_v11  ;;  %v858_v19 = vsel %vm2412_vm9, %v852_v25, %v857_v16  ;;  %v1662_v1 = vcombine.low %v2425_v31, %v2454_v24 }
  0x4a   :  { %v874_v40 = vrot.slane %v2889_v26, 5  ;;  %v875_v33 = vrot.slane %v2890_v55, 6  ;;  %v2472_v7 = vsel %vm2346_vm6, %v1655_v54, %v652_v51  ;;  %v654_v62 = vrot.slane %v652_v51, 4  ;;  %1870 = vmatprep.subr.bf16.mxu0 %v1950_v32 }
  0x4b   :  { %1824 = vmatprep.mubr.msk.bf16.mxu1 %vm302_vm2, %v2891_v6  ;;  %vm1141_vm10 = vcmask 1041408   ;;  %vm1142_vm11 = vcmask 1045508   ;;  %v1675_v18 = vcombine.low %v851_v28, %v858_v19  ;;  %v2892_v22 = vshrl.u32 %v2184_v50, 16 }
  0x4c   :  { %v876_v21 = vor.u32 %v875_v33, %v874_v40  ;;  %v2893_v23 = vshll.u32 %v2184_v50, 16  ;;  %v656_v25 = vsel %vm2346_vm6, %v654_v62, %v655_v39  ;;  %v883_v44 = vshrl.u32 %v2196_v57, 16  ;;  %1871 = vmatpush3.bf16.msra.mxu0 %v1950_v32  ;;  %vm2534_vm12 = vmor %vm1141_vm10, %vm1142_vm11 }
  0x4d   :  { %v878_v27 = vrot.slane %v2892_v22, 5  ;;  %v2894_v49 = vshll.u32 %v2196_v57, 16  ;;  %v1656_v14 = vrot.slane %v2145_v8, 9  ;;  %v1663_v28 = vcombine.low %v2472_v7, %v656_v25 }
  0x4e   :  { %v879_v13 = vrot.slane %v2893_v23, 6  ;;  %v877_v16 = vrot.slane %v876_v21, 4  ;;  %v659_v51 = vrot.slane %v2150_v17, 5  ;;  %v885_v45 = vrot.slane %v883_v44, 5 }
  0x4f   :  { %v886_v46 = vrot.slane %v2894_v49, 6  ;;  %v662_v26 = vrot.slane %v2158_v30, 5  ;;  %v2895_v40 = vshrl.u32 %v2201_v58, 16  ;;  %v2896_v55 = vshll.u32 %v2201_v58, 16  ;;  %1837 = vmatmul.mubr.msk.bf16.gmra.mxu0 %vm302_vm2, %v1660_v20 }
  0x50   :  { %v880_v54 = vor.u32 %v879_v13, %v878_v27  ;;  %v2495_v32 = vsel %vm2346_vm6, %v1656_v14, %v659_v51  ;;  %v661_v7 = vrot.slane %v659_v51, 4  ;;  %v2897_v22 = vshrl.u32 %v2208_v63, 16  ;;  %1840 = vmatprep.mubr.msk.bf16.mxu0 %vm302_vm2, %v1661_v29 }
  0x51   :  { %v889_v39 = vrot.slane %v2895_v40, 5  ;;  %v890_v33 = vrot.slane %v2896_v55, 6  ;;  %v887_v62 = vor.u32 %v886_v46, %v885_v45  ;;  %v2898_v23 = vshll.u32 %v2208_v63, 16  ;;  %1825 = vmatmul.mubr.msk.bf16.gmra.mxu1 %vm302_vm2, %v1638_v36 }
  0x52   :  { %v881_v6 = vsel %vm2412_vm9, %v877_v16, %v880_v54  ;;  %v882_v19 = vrot.slane %v880_v54, 4  ;;  %v893_v27 = vrot.slane %v2897_v22, 5  ;;  %v2509_v25 = vsel %vm2346_vm6, %v661_v7, %v662_v26  ;;  %1852 = vmatprep.mubr.msk.bf16.mxu1 %vm302_vm2, %v1675_v18  ;;  %v1487_v22 = vld [vmem:[%s2853_s4 + $0x68] sm:$0xff] }
  0x53   :  { %v891_v21 = vor.u32 %v890_v33, %v889_v39  ;;  %v894_v13 = vrot.slane %v2898_v23, 6  ;;  %v898_v20 = vshrl.u32 %v2217_v10, 16  ;;  %v2899_v44 = vshll.u32 %v2217_v10, 16 }
  0x54   :  { %v2900_v46 = vshrl.u32 %v2246_v41, 16  ;;  %v888_v16 = vsel %vm2412_vm9, %v882_v19, %v887_v62  ;;  %v1664_v36 = vcombine.low %v2495_v32, %v2509_v25  ;;  %v2901_v45 = vshll.u32 %v2246_v41, 16 }
  0x55   :  { %v901_v49 = vrot.slane %v2899_v44, 6  ;;  %v892_v29 = vrot.slane %v891_v21, 4  ;;  %v895_v61 = vor.u32 %v894_v13, %v893_v27  ;;  %v1677_v54 = vcombine.low %v881_v6, %v888_v16 }
  0x56   :  { %v904_v14 = vrot.slane %v2900_v46, 5  ;;  %v900_v51 = vrot.slane %v898_v20, 5  ;;  %v905_v26 = vrot.slane %v2901_v45, 6  ;;  %v2902_v40 = vshrl.u32 %v2267_v59, 16 }
  0x57   :  { %v896_v55 = vsel %vm2412_vm9, %v892_v29, %v895_v61  ;;  %v897_v18 = vrot.slane %v895_v61, 4  ;;  %v2903_v33 = vshll.u32 %v2267_v59, 16  ;;  %v913_v7 = vshrl.u32 %v2272_v0, 16  ;;  %1841 = vmatmul.mubr.msk.bf16.gmra.mxu0 %vm302_vm2, %v1662_v1 }
  0x58   :  { %v908_v39 = vrot.slane %v2902_v40, 5  ;;  %v902_v32 = vor.u32 %v901_v49, %v900_v51  ;;  %v906_v62 = vor.u32 %v905_v26, %v904_v14  ;;  %v2904_v6 = vshll.u32 %v2272_v0, 16  ;;  %1844 = vmatprep.mubr.msk.bf16.mxu0 %vm302_vm2, %v1663_v28 }
  0x59   :  { %v909_v19 = vrot.slane %v2903_v33, 6  ;;  %v1693_v27 = vrot.slane %v2042_v2, 10  ;;  %v915_v13 = vrot.slane %v913_v7, 5  ;;  %v1146_v25 = vrot.slane %v2047_v3, 6  ;;  %1853 = vmatmul.mubr.msk.bf16.vlgmr.msra.gmra.mxu1 %vm302_vm2, %v2443_v5 }
  0x5a   :  { %v916_v21 = vrot.slane %v2904_v6, 6  ;;  %v1149_v20 = vrot.slane %v2052_v4, 6  ;;  %v903_v44 = vsel %vm2412_vm9, %v897_v18, %v902_v32  ;;  %v907_v49 = vrot.slane %v906_v62, 4  ;;  %1856 = vmatprep.mubr.msk.bf16.mxu1 %vm302_vm2, %v1677_v54 }
  0x5b   :  { %v910_v23 = vor.u32 %v909_v19, %v908_v39  ;;  %v2907_v46 = vshrl.u32 %v2288_v34, 16  ;;  %v2908_v16 = vshll.u32 %v2288_v34, 16  ;;  %v1678_v2 = vcombine.low %v896_v55, %v903_v44 }
  0x5c   :  { %v917_v3 = vor.u32 %v916_v21, %v915_v13  ;;  %v1147_v4 = vsel %vm2534_vm12, %v1693_v27, %v1146_v25  ;;  %v1148_v45 = vrot.slane %v1146_v25, 4  ;;  %v2909_v31 = vshrl.u32 %v2301_v56, 16 }
  0x5d   :  { %v919_v14 = vrot.slane %v2907_v46, 5  ;;  %v920_v29 = vrot.slane %v2908_v16, 6  ;;  %v912_v61 = vrot.slane %v910_v23, 4  ;;  %v911_v51 = vsel %vm2412_vm9, %v907_v49, %v910_v23 }
  0x5e   :  { %v923_v24 = vrot.slane %v2909_v31, 5  ;;  %v2910_v40 = vshll.u32 %v2301_v56, 16  ;;  %v928_v5 = vshrl.u32 %v2318_v15, 16  ;;  %v2911_v28 = vshll.u32 %v2318_v15, 16 }
  0x5f   :  { %v921_v26 = vor.u32 %v920_v29, %v919_v14  ;;  %v918_v1 = vsel %vm2412_vm9, %v912_v61, %v917_v3  ;;  %v1150_v33 = vsel %vm2534_vm12, %v1148_v45, %v1149_v20  ;;  %v1694_v7 = vrot.slane %v2107_v38, 10  ;;  %1845 = vmatmul.mubr.msk.bf16.gmra.mxu0 %vm302_vm2, %v1664_v36 }
  0x60   :  { %v924_v39 = vrot.slane %v2910_v40, 6  ;;  %v931_v55 = vrot.slane %v2911_v28, 6  ;;  %v1679_v18 = vcombine.low %v911_v51, %v918_v1  ;;  %v1701_v32 = vcombine.low %v1147_v4, %v1150_v33 }
  0x61   :  { %v922_v19 = vrot.slane %v921_v26, 4  ;;  %v930_v62 = vrot.slane %v928_v5, 5  ;;  %v1153_v6 = vrot.slane %v2115_v43, 6  ;;  %v1156_v21 = vrot.slane %v2126_v48, 6  ;;  %1857 = vmatmul.mubr.msk.bf16.gmra.mxu1 %vm302_vm2, %v1678_v2 }
  0x62   :  { %v925_v54 = vor.u32 %v924_v39, %v923_v24  ;;  %v936_v27 = vor.u32 %v2110_v42, %v2101_v37  ;;  %v940_v23 = vor.u32 %v2128_v52, %v2121_v47  ;;  %v943_v13 = vshrl.u32 %v2072_v12, 16  ;;  %1872 = vmatprep.mubr.msk.bf16.mxu0 %vm302_vm2, %v1701_v32  ;;  %1860 = vmatprep.mubr.msk.bf16.mxu1 %vm302_vm2, %v1679_v18 }
  0x63   :  { %v932_v38 = vor.u32 %v931_v55, %v930_v62  ;;  %v1154_v44 = vsel %vm2534_vm12, %v1694_v7, %v1153_v6  ;;  %v1155_v49 = vrot.slane %v1153_v6, 4  ;;  %v1695_v42 = vrot.slane %v2166_v35, 10 }
  0x64   :  { %v926_v25 = vsel %vm2412_vm9, %v922_v19, %v925_v54  ;;  %v927_v20 = vrot.slane %v925_v54, 4  ;;  %v937_v43 = vrot.slane %v936_v27, 4  ;;  %v942_v46 = vrot.slane %v940_v23, 4 }
  0x65   :  { %v945_v48 = vrot.slane %v943_v13, 5  ;;  %v1160_v47 = vrot.slane %v2184_v50, 6  ;;  %v1163_v52 = vrot.slane %v2196_v57, 6  ;;  %v1157_v16 = vsel %vm2534_vm12, %v1155_v49, %v1156_v21 }
  0x66   :  { %v933_v37 = vsel %vm2412_vm9, %v927_v20, %v932_v38  ;;  %v941_v36 = vsel %vm2412_vm9, %v937_v43, %v940_v23  ;;  %v2912_v29 = vshrl.u32 %v2145_v8, 16  ;;  %v1702_v35 = vcombine.low %v1154_v44, %v1157_v16 }
  0x67   :  { %v1680_v14 = vcombine.low %v926_v25, %v933_v37  ;;  %v947_v50 = vor.u32 %v2130_v53, %v945_v48  ;;  %v1161_v57 = vsel %vm2534_vm12, %v1695_v42, %v1160_v47  ;;  %v1162_v2 = vrot.slane %v1160_v47, 4 }
  0x68   :  { %v949_v61 = vrot.slane %v2912_v29, 5  ;;  %v2913_v3 = vshll.u32 %v2145_v8, 16  ;;  %v2914_v51 = vshrl.u32 %v2150_v17, 16  ;;  %v2915_v26 = vshll.u32 %v2150_v17, 16  ;;  %1873 = vmatmul.mubr.msk.bf16.vlgmr.msra.gmra.mxu0 %vm302_vm2, %v1702_v35 }
  0x69   :  { %v958_v24 = vshrl.u32 %v2158_v30, 16  ;;  %v948_v1 = vsel %vm2412_vm9, %v942_v46, %v947_v50  ;;  %v1164_v53 = vsel %vm2534_vm12, %v1162_v2, %v1163_v52  ;;  %v2916_v40 = vshll.u32 %v2158_v30, 16  ;;  %1861 = vmatmul.mubr.msk.bf16.gmra.mxu1 %vm302_vm2, %v1680_v14  ;;  %v1486_v50 = vld [vmem:[%s2853_s4 + $0x60] sm:$0xff]  ;;  %v1484_v2 = vld [vmem:[%s2853_s4 + $0x50] sm:$0xff] }
  0x6a   :  { %v950_v4 = vrot.slane %v2913_v3, 6  ;;  %v953_v45 = vrot.slane %v2914_v51, 5  ;;  %v954_v31 = vrot.slane %v2915_v26, 6  ;;  %v1696_v5 = vrot.slane %v2201_v58, 10  ;;  %v1483_v3 = vld [vmem:[%s2853_s4 + $0x48] sm:$0xff]  ;;  %v1481_v51 = vld [vmem:[%s2853_s4 + $0x38] sm:$0xff] }
  0x6b   :  { %v961_v39 = vrot.slane %v2916_v40, 6  ;;  %v1681_v28 = vcombine.low %v941_v36, %v948_v1  ;;  %v1703_v55 = vcombine.low %v1161_v57, %v1164_v53  ;;  %v960_v19 = vrot.slane %v958_v24, 5  ;;  %v1485_v57 = vld [vmem:[%s2853_s4 + $0x58] sm:$0xff]  ;;  %v1479_v26 = vld [vmem:[%s2853_s4 + $0x28] sm:$0xff]  ;;  %v1476_v1 = vld [vmem:[%s2853_s4 + $0x10] sm:$0xff] }
  0x6c   :  { %v951_v18 = vor.u32 %v950_v4, %v949_v61  ;;  %v955_v33 = vor.u32 %v954_v31, %v953_v45  ;;  %v1167_v7 = vrot.slane %v2208_v63, 6  ;;  %v1170_v32 = vrot.slane %v2217_v10, 6  ;;  %v1482_v4 = vld [vmem:[%s2853_s4 + $0x40] sm:$0xff]  ;;  %v1480_v45 = vld [vmem:[%s2853_s4 + $0x30] sm:$0xff]  ;;  %v1477_v24 = vld [vmem:[%s2853_s4 + $0x18] sm:$0xff] }
  0x6d   :  { %v1697_v54 = vrot.slane %v2246_v41, 10  ;;  %v1174_v21 = vrot.slane %v2267_v59, 6  ;;  %v1177_v27 = vrot.slane %v2272_v0, 6  ;;  %v962_v58 = vor.u32 %v961_v39, %v960_v19  ;;  %1876 = vmatprep.mubr.msk.bf16.mxu0 %vm302_vm2, %v1703_v55  ;;  %1864 = vmatprep.mubr.msk.bf16.mxu1 %vm302_vm2, %v1681_v28  ;;  %v1478_v31 = vld [vmem:[%s2853_s4 + $0x20] sm:$0xff]  ;;  %v1475_v53 = vld [vmem:[%s2853_s4 + $0x8] sm:$0xff] }
  0x6e   :  { %v952_v62 = vrot.slane %v951_v18, 4  ;;  %v957_v6 = vrot.slane %v955_v33, 4  ;;  %v1169_v23 = vrot.slane %v1167_v7, 4  ;;  %v1168_v41 = vsel %vm2534_vm12, %v1696_v5, %v1167_v7  ;;  %v1474_v40 = vld [vmem:[%s2853_s4] sm:$0xff] }
  0x6f   :  { %v1176_v10 = vrot.slane %v1174_v21, 4  ;;  %v1181_v13 = vrot.slane %v2301_v56, 6  ;;  %v1175_v25 = vsel %vm2534_vm12, %v1697_v54, %v1174_v21  ;;  %v1188_v49 = vrot.slane %v2067_v11, 6 }
  0x70   :  { %v956_v63 = vsel %vm2412_vm9, %v952_v62, %v955_v33  ;;  %v963_v59 = vsel %vm2412_vm9, %v957_v6, %v962_v58  ;;  %v1171_v0 = vsel %vm2534_vm12, %v1169_v23, %v1170_v32  ;;  %v1698_v56 = vrot.slane %v2288_v34, 10 }
  0x71   :  { %v1682_v20 = vcombine.low %v956_v63, %v963_v59  ;;  %v1178_v38 = vsel %vm2534_vm12, %v1176_v10, %v1177_v27  ;;  %v1704_v44 = vcombine.low %v1168_v41, %v1171_v0  ;;  %v1183_v46 = vrot.slane %v1181_v13, 4 }
  0x72   :  { %v1705_v43 = vcombine.low %v1175_v25, %v1178_v38  ;;  %v1184_v60 = vrot.slane %v2318_v15, 6  ;;  %v1699_v48 = vrot.slane %v2061_v9, 10  ;;  %v1190_v37 = vrot.slane %v1188_v49, 4 }
  0x73   :  { %v1191_v42 = vrot.slane %v2072_v12, 6  ;;  %1877 = vmatmul.mubr.msk.bf16.gmra.mxu0 %vm302_vm2, %v1704_v44  ;;  %1865 = vmatmul.mubr.msk.bf16.gmra.mxu1 %vm302_vm2, %v1682_v20  ;;  %v1182_v11 = vsel %vm2534_vm12, %v1698_v56, %v1181_v13  ;;  %v1195_v47 = vrot.slane %v2150_v17, 6  ;;  %v1700_v14 = vrot.slane %v2145_v8, 10  ;;  %v1489_v8 = vld [vmem:[%s2853_s4 + $0x78] sm:$0xff] }
  0x74   :  { %1880 = vmatprep.mubr.msk.bf16.mxu0 %vm302_vm2, %v1705_v43  ;;  %v1185_v34 = vsel %vm2534_vm12, %v1183_v46, %v1184_v60  ;;  %v1189_v9 = vsel %vm2534_vm12, %v1699_v48, %v1188_v49  ;;  %v1198_v36 = vrot.slane %v2158_v30, 6  ;;  %v1998_v35 = vmov 0.0   ;;  %v1488_v30 = vld [vmem:[%s2853_s4 + $0x70] sm:$0xff] }
  0x75   :  { %v1192_v12 = vsel %vm2534_vm12, %v1190_v37, %v1191_v42  ;;  %v1706_v15 = vcombine.low %v1182_v11, %v1185_v34  ;;  %v1197_v16 = vrot.slane %v1195_v47, 4  ;;  %v1196_v17 = vsel %vm2534_vm12, %v1700_v14, %v1195_v47  ;;  %1888 = vmatprep.subr.mxu1 %v1998_v35 }
  0x76   :  { %v1707_v52 = vcombine.low %v1189_v9, %v1192_v12  ;;  %1889 = vmatpush3.msra.mxu1 %v1489_v8  ;;  %vm1999_vm13 = vmmov 0   ;;  %vm1506_vm14 = vcmask 1041409   ;;  %vm1509_vm15 = vcmask 1042434  }
  0x77   :  { %v1199_v29 = vsel %vm2534_vm12, %v1197_v16, %v1198_v36  ;;  %1890 = vmatprep.subr.mxu1 %v1998_v35  ;;  %1920 = vmatprep.mubr.msk.f32.mxu1 %vm1999_vm13, %v1998_v35  ;;  %vm1512_vm0 = vcmask 1043459   ;;  %vm1515_vm1 = vcmask 1044484   ;;  %vm1521_vm3 = vcmask 1046534  }
  0x78   :  { %v1708_v61 = vcombine.low %v1196_v17, %v1199_v29  ;;  %1891 = vmatpush3.msra.mxu1 %v1488_v30  ;;  %vm1524_vm4 = vcmask 1047559  }
  0x79   :  { %1892 = vmatprep.subr.mxu1 %v1998_v35 }
  0x7a   :  { %1893 = vmatpush3.msra.mxu1 %v1487_v22 }
  0x7b   :  { %1881 = vmatmul.mubr.msk.bf16.gmra.mxu0 %vm302_vm2, %v1706_v15  ;;  %1894 = vmatprep.subr.mxu1 %v1998_v35 }
  0x7c   :  { %1884 = vmatprep.mubr.msk.bf16.mxu0 %vm302_vm2, %v1707_v52  ;;  %1895 = vmatpush3.msra.mxu1 %v1486_v50 }
  0x7d   :  { %1896 = vmatprep.subr.mxu1 %v1998_v35 }
  0x7e   :  { %1897 = vmatpush3.msra.mxu1 %v1485_v57 }
  0x7f   :  { %1898 = vmatprep.subr.mxu1 %v1998_v35 }
  0x80   :  { %1899 = vmatpush3.msra.mxu1 %v1484_v2 }
  0x81   :  { %1900 = vmatprep.subr.mxu1 %v1998_v35 }
  0x82   :  { %1901 = vmatpush3.msra.mxu1 %v1483_v3 }
  0x83   :  { %1885 = vmatmul.mubr.msk.bf16.gmra.mxu0 %vm302_vm2, %v1708_v61  ;;  %1902 = vmatprep.subr.mxu1 %v1998_v35  ;;  %vm1518_vm2 = vcmask 1045509  }
  0x84   :  { %1903 = vmatpush3.msra.mxu1 %v1482_v4 }
  0x85   :  { %1904 = vmatprep.subr.mxu1 %v1998_v35 }
  0x86   :  { %1905 = vmatpush3.msra.mxu1 %v1481_v51 }
  0x87   :  { %1906 = vmatprep.subr.mxu1 %v1998_v35 }
  0x88   :  { %1907 = vmatpush3.msra.mxu1 %v1480_v45 }
  0x89   :  { %1908 = vmatprep.subr.mxu1 %v1998_v35 }
  0x8a   :  { %1909 = vmatpush3.msra.mxu1 %v1479_v26 }
  0x8b   :  { %1910 = vmatprep.subr.mxu1 %v1998_v35 }
  0x8c   :  { %1911 = vmatpush3.msra.mxu1 %v1478_v31 }
  0x8d   :  { %1912 = vmatprep.subr.mxu1 %v1998_v35 }
  0x8e   :  { %1913 = vmatpush3.msra.mxu1 %v1477_v24 }
  0x8f   :  { %1914 = vmatprep.subr.mxu1 %v1998_v35 }
  0x90   :  { %1915 = vmatpush3.msra.mxu1 %v1476_v1 }
  0x91   :  { %1916 = vmatprep.subr.mxu1 %v1998_v35 }
  0x92   :  { %1917 = vmatpush3.msra.mxu1 %v1475_v53 }
  0x93   :  { %1918 = vmatprep.subr.mxu1 %v1998_v35 }
  0x94   :  { %1919 = vmatpush3.msra.mxu1 %v1474_v40 }
  0xe6   :  { %v1794_v39 = vpop.f32.mrf.mxu0 }
  0xe8   :  { %v361_v5 = vpop.f32.mrf.mxu0 }
  0xea   :  { %v1795_v28 = vpop.f32.mrf.mxu0 }
  0xec   :  { %v364_v33 = vpop.f32.mrf.mxu0 }
  0xef   :  { %v2710_v55 = vpop.f32.mrf.mxu1 }
  0xf1   :  { %v2712_v18 = vpop.f32.mrf.mxu1 }
  0xf3   :  { %v2714_v19 = vpop.f32.mrf.mxu1 }
  0xf5   :  { %v2716_v7 = vpop.f32.mrf.mxu1 }
  0xf6   :  { %v2718_v32 = vpop.f32.mrf.mxu0 }
  0xf7   :  { %v1814_v54 = vpop.f32.mrf.mxu1 }
  0xf8   :  { %v2720_v62 = vpop.f32.mrf.mxu0  ;;  %v543_v2 = vadd.f32 %v1814_v54, %v1794_v39 }
  0xf9   :  { %v534_v6 = vpop.f32.mrf.mxu1 }
  0xfa   :  { %v2722_v21 = vpop.f32.mrf.mxu0  ;;  %v535_v51 = vadd.f32 %v534_v6, %v361_v5  ;;  %v2774_v5 = vld [vmem:[%s2852_s3] sm:$0xff] }
  0xfb   :  { %v1815_v27 = vpop.f32.mrf.mxu1 }
  0xfc   :  { %v2724_v58 = vpop.f32.mrf.mxu0  ;;  %v546_v45 = vadd.f32 %v1815_v27, %v1795_v28 }
  0xfd   :  { %v537_v23 = vpop.f32.mrf.mxu1 }
  0xfe   :  { %v538_v1 = vadd.f32 %v537_v23, %v364_v33  ;;  %v2779_v33 = vld [vmem:[%s2852_s3 + $0x8] sm:$0xff] }
  0xff   :  { %v2726_v63 = vpop.f32.mrf.mxu0  ;;  %v1818_v41 = vpop.f32.mrf.mxu1 }
 0x100   :  { %v559_v54 = vadd.f32 %v1818_v41, %v2718_v32 }
 0x101   :  { %v2728_v10 = vpop.f32.mrf.mxu0  ;;  %v550_v13 = vpop.f32.mrf.mxu1 }
 0x103   :  { %v2730_v59 = vpop.f32.mrf.mxu0  ;;  %v1819_v0 = vpop.f32.mrf.mxu1 }
 0x104   :  { %v562_v32 = vadd.f32 %v1819_v0, %v2722_v21 }
 0x105   :  { %v2732_v25 = vpop.f32.mrf.mxu0  ;;  %v553_v20 = vpop.f32.mrf.mxu1 }
 0x107   :  { %v1834_v38 = vpop.f32.mrf.mxu0 }
 0x108   :  { %v827_v26 = vadd.f32 %v1834_v38, %v543_v2 }
 0x109   :  { %v2734_v44 = vpop.f32.mrf.mxu1  ;;  %v762_v49 = vpop.f32.mrf.mxu0 }
 0x10a   :  { %v825_v53 = vadd.f32 %v762_v49, %v535_v51  ;;  %v551_v49 = vadd.f32 %v550_v13, %v2720_v62 }
 0x10b   :  { %v566_v43 = vpop.f32.mrf.mxu1  ;;  %v1835_v56 = vpop.f32.mrf.mxu0 }
 0x10c   :  { %v828_v40 = vadd.f32 %v1835_v56, %v546_v45 }
 0x10d   :  { %v2736_v46 = vpop.f32.mrf.mxu1  ;;  %v765_v60 = vpop.f32.mrf.mxu0 }
 0x10f   :  { %v2738_v48 = vpop.f32.mrf.mxu1  ;;  %v1838_v37 = vpop.f32.mrf.mxu0 }
 0x110   :  { %v831_v41 = vadd.f32 %v1838_v37, %v559_v54  ;;  %v570_v37 = vadd.f32 %v2738_v48, %v2732_v25 }
 0x111   :  { %v2740_v42 = vpop.f32.mrf.mxu1  ;;  %v778_v11 = vpop.f32.mrf.mxu0 }
 0x113   :  { %v2742_v34 = vpop.f32.mrf.mxu1  ;;  %v1839_v47 = vpop.f32.mrf.mxu0 }
 0x114   :  { %v832_v62 = vadd.f32 %v1839_v47, %v562_v32 }
 0x115   :  { %v2744_v9 = vpop.f32.mrf.mxu1  ;;  %v2746_v12 = vpop.f32.mrf.mxu0 }
 0x117   :  { %v2748_v15 = vpop.f32.mrf.mxu1  ;;  %v2750_v52 = vpop.f32.mrf.mxu0 }
 0x118   :  { %2917 = vst [vmem:[#allocation8_spill] sm:$0xff] %v2750_v52 }
 0x119   :  { %v1854_v14 = vpop.f32.mrf.mxu1  ;;  %v2752_v16 = vpop.f32.mrf.mxu0 }
 0x11a   :  { %2918 = vst [vmem:[#allocation9_spill] sm:$0xff] %v2752_v16 }
 0x11b   :  { %v1062_v36 = vpop.f32.mrf.mxu1  ;;  %v2754_v17 = vpop.f32.mrf.mxu0 }
 0x11c   :  { %2919 = vst [vmem:[#allocation10_spill] sm:$0xff] %v2754_v17  ;;  %v1125_v16 = vadd.f32 %v1062_v36, %v825_v53 }
 0x11d   :  { %v1855_v29 = vpop.f32.mrf.mxu1  ;;  %v2756_v61 = vpop.f32.mrf.mxu0 }
 0x11e   :  { %2920 = vst [vmem:[#allocation11_spill] sm:$0xff] %v2756_v61  ;;  %v1127_v61 = vadd.f32 %v1854_v14, %v827_v26  ;;  %v1128_v52 = vadd.f32 %v1855_v29, %v828_v40 }
 0x11f   :  { %v1065_v35 = vpop.f32.mrf.mxu1  ;;  %v2758_v8 = vpop.f32.mrf.mxu0 }
 0x120   :  { %2921 = vst [vmem:[#allocation12_spill] sm:$0xff] %v2758_v8 }
 0x121   :  { %v1858_v30 = vpop.f32.mrf.mxu1  ;;  %v2760_v22 = vpop.f32.mrf.mxu0 }
 0x122   :  { %2922 = vst [vmem:[#allocation13_spill] sm:$0xff] %v2760_v22  ;;  %v826_v22 = vadd.f32 %v765_v60, %v538_v1  ;;  %v554_v60 = vadd.f32 %v553_v20, %v2724_v58  ;;  %v578_v20 = vadd.f32 %v2736_v46, %v2730_v59  ;;  %v594_v59 = vadd.f32 %v2744_v9, %v2714_v19 }
 0x123   :  { %v1078_v50 = vpop.f32.mrf.mxu1  ;;  %v2762_v57 = vpop.f32.mrf.mxu0 }
 0x124   :  { %2923 = vst [vmem:[#allocation14_spill] sm:$0xff] %v2762_v57  ;;  %v1126_v6 = vadd.f32 %v1065_v35, %v826_v22 }
 0x125   :  { %v1859_v3 = vpop.f32.mrf.mxu1  ;;  %v2764_v4 = vpop.f32.mrf.mxu0  ;;  %v2927_v40 = vld [vmem:[#allocation11_spill] sm:$0xff] }
 0x126   :  { %v834_v54 = vadd.f32 %v2927_v40, %v570_v37 }
 0x127   :  { %v1081_v31 = vpop.f32.mrf.mxu1 }
 0x128   :  { %v1874_v24 = vpop.f32.mrf.mxu0 }
 0x129   :  { %v2766_v8 = vpop.f32.mrf.mxu1  ;;  %v1363_v57 = vadd.f32 %v1874_v24, %v1127_v61  ;;  %v575_v61 = vadd.f32 %v2734_v44, %v2726_v63  ;;  %v2925_v24 = vld [vmem:[#allocation9_spill] sm:$0xff] }
 0x12a   :  { %v1298_v17 = vpop.f32.mrf.mxu0 }
 0x12b   :  { %v2768_v39 = vpop.f32.mrf.mxu1  ;;  %v1361_v27 = vadd.f32 %v1298_v17, %v1125_v16  ;;  %v1381_v14 = vadd.f32 %v2774_v5, %v1363_v57  ;;  %v567_v16 = vadd.f32 %v566_v43, %v2728_v10  ;;  %v829_v17 = vadd.f32 %v778_v11, %v551_v49 }
 0x12c   :  { %v1875_v28 = vpop.f32.mrf.mxu0  ;;  %v830_v10 = vadd.f32 %v2746_v12, %v554_v60  ;;  %v1132_v43 = vadd.f32 %v1859_v3, %v832_v62  ;;  %v583_v57 = vadd.f32 %v2742_v34, %v2712_v18  ;;  %v586_v12 = vadd.f32 %v2748_v15, %v2716_v7  ;;  %v2924_v3 = vld [vmem:[#allocation8_spill] sm:$0xff] }
 0x12d   :  { %v2781_v23 = vpop.f32.mrf.mxu1  ;;  %v1364_v38 = vadd.f32 %v1875_v28, %v1128_v52  ;;  %v1131_v52 = vadd.f32 %v1858_v30, %v831_v41  ;;  %v1379_v21 = vadd.f32 %v2774_v5, %v1361_v27  ;;  %v1129_v22 = vadd.f32 %v1078_v50, %v829_v17  ;;  %v2928_v28 = vld [vmem:[#allocation12_spill] sm:$0xff] }
 0x12e   :  { %v1301_v56 = vpop.f32.mrf.mxu0  ;;  %v591_v30 = vadd.f32 %v2740_v42, %v2710_v55  ;;  %v1130_v25 = vadd.f32 %v1081_v31, %v830_v10  ;;  %v835_v26 = vadd.f32 %v2924_v3, %v575_v61  ;;  %v833_v55 = vadd.f32 %v2925_v24, %v567_v16  ;;  %v2926_v31 = vld [vmem:[#allocation10_spill] sm:$0xff] }
 0x12f   :  { %v1382_v36 = vadd.f32 %v2779_v33, %v1364_v38  ;;  %v1362_v29 = vadd.f32 %v1301_v56, %v1126_v6  ;;  %v1097_v0 = vpop.f32.mrf.mxu1  ;;  %v836_v53 = vadd.f32 %v2926_v31, %v578_v20  ;;  %v2929_v56 = vld [vmem:[#allocation13_spill] sm:$0xff] }
 0x130   :  { %v839_v6 = vadd.f32 %v2928_v28, %v591_v30  ;;  %v837_v60 = vadd.f32 %v2929_v56, %v583_v57  ;;  %v1135_v61 = vadd.f32 %v2766_v8, %v835_v26  ;;  %v1134_v20 = vadd.f32 %v1097_v0, %v834_v54 }
 0x131   :  { %v1402_v13 = vmax.f32 %v1381_v14, %v1382_v36  ;;  %v1380_v58 = vadd.f32 %v2779_v33, %v1362_v29  ;;  %v2930_v14 = vld [vmem:[#allocation14_spill] sm:$0xff]  ;;  %v838_v29 = vadd.f32 %v2764_v4, %v586_v12 }
 0x132   :  { %v840_v36 = vadd.f32 %v2930_v14, %v594_v59 }
 0x133   :  { %v1878_v35 = vpop.f32.mrf.mxu0  ;;  %v1403_v11 = vrot.slane %v1402_v13, 4  ;;  %v1395_v47 = vmax.f32 %v1379_v21, %v1380_v58  ;;  %v1866_v51 = vpop.f32.mrf.mxu1  ;;  %v1133_v21 = vadd.f32 %v2768_v39, %v833_v55  ;;  %v2824_v58 = vld [vmem:[%s2851_s2] ss:$0 sm:$0xff] }
 0x134   :  { %v1367_v63 = vadd.f32 %v1878_v35, %v1131_v52 }
 0x135   :  { %v1314_v44 = vpop.f32.mrf.mxu0  ;;  %v1404_v48 = vmax.f32 %v1402_v13, %v1403_v11  ;;  %v1396_v50 = vrot.slane %v1395_v47, 4  ;;  %v1110_v49 = vpop.f32.mrf.mxu1  ;;  %v1136_v13 = vadd.f32 %v2781_v23, %v836_v53 }
 0x136   :  { %v1365_v46 = vadd.f32 %v1314_v44, %v1129_v22  ;;  %v1385_v42 = vadd.f32 %v2774_v5, %v1367_v63  ;;  %v1137_v11 = vadd.f32 %v1110_v49, %v837_v60 }
 0x137   :  { %v1879_v2 = vpop.f32.mrf.mxu0  ;;  %v1405_v34 = vrot.slane %v1404_v48, 2  ;;  %v1397_v1 = vmax.f32 %v1395_v47, %v1396_v50  ;;  %v1867_v63 = vpop.f32.mrf.mxu1 }
 0x138   :  { %v1368_v45 = vadd.f32 %v1879_v2, %v1132_v43  ;;  %v1383_v7 = vadd.f32 %v2774_v5, %v1365_v46  ;;  %v1139_v43 = vadd.f32 %v1866_v51, %v839_v6  ;;  %v1140_v2 = vadd.f32 %v1867_v63, %v840_v36 }
 0x139   :  { %v1317_v18 = vpop.f32.mrf.mxu0  ;;  %v1406_v27 = vmax.f32 %v1404_v48, %v1405_v34  ;;  %v1398_v38 = vrot.slane %v1397_v1, 2  ;;  %v1113_v3 = vpop.f32.mrf.mxu1 }
 0x13a   :  { %v1386_v19 = vadd.f32 %v2779_v33, %v1368_v45  ;;  %v1366_v9 = vadd.f32 %v1317_v18, %v1130_v25  ;;  %v1138_v53 = vadd.f32 %v1113_v3, %v838_v29 }
 0x13b   :  { %v1882_v15 = vpop.f32.mrf.mxu0  ;;  %v1407_v17 = vrot.slane %v1406_v27, 1  ;;  %v1399_v52 = vmax.f32 %v1397_v1, %v1398_v38 }
 0x13c   :  { %v1416_v32 = vmax.f32 %v1385_v42, %v1386_v19  ;;  %v1384_v41 = vadd.f32 %v2779_v33, %v1366_v9  ;;  %v1371_v37 = vadd.f32 %v1882_v15, %v1135_v61 }
 0x13d   :  { %v1330_v16 = vpop.f32.mrf.mxu0  ;;  %v1408_v22 = vmax.f32 %v1406_v27, %v1407_v17  ;;  %v1400_v8 = vrot.slane %v1399_v52, 1 }
 0x13e   :  { %v1417_v35 = vrot.slane %v1416_v32, 4  ;;  %v1409_v62 = vmax.f32 %v1383_v7, %v1384_v41  ;;  %v1369_v47 = vadd.f32 %v1330_v16, %v1133_v21  ;;  %v1389_v0 = vadd.f32 %v2774_v5, %v1371_v37 }
 0x13f   :  { %v1883_v4 = vpop.f32.mrf.mxu0  ;;  %v1459_v23 = vadd.f32 %v2824_v58, %v1408_v22  ;;  %v1401_v57 = vmax.f32 %v1399_v52, %v1400_v8 }
 0x140   :  { %v1418_v44 = vmax.f32 %v1416_v32, %v1417_v35  ;;  %v1410_v10 = vrot.slane %v1409_v62, 4  ;;  %v1372_v30 = vadd.f32 %v1883_v4, %v1136_v13  ;;  %v1387_v24 = vadd.f32 %v2774_v5, %v1369_v47 }
 0x141   :  { %v1333_v39 = vpop.f32.mrf.mxu0  ;;  %v1467_v45 = vmax.f32 %v1459_v23, 0.0  ;;  %v1458_v12 = vadd.f32 %v2824_v58, %v1401_v57 }
 0x142   :  { %v1419_v59 = vrot.slane %v1418_v44, 2  ;;  %v1411_v46 = vmax.f32 %v1409_v62, %v1410_v10  ;;  %v1390_v25 = vadd.f32 %v2779_v33, %v1372_v30  ;;  %v1370_v48 = vadd.f32 %v1333_v39, %v1134_v20 }
 0x143   :  { %v1886_v50 = vpop.f32.mrf.mxu0  ;;  %v1505_v1 = vrot.slane %v1467_v45, 7  ;;  %v1466_v19 = vmax.f32 %v1458_v12, 0.0 }
 0x144   :  { %v1420_v51 = vmax.f32 %v1418_v44, %v1419_v59  ;;  %v1412_v26 = vrot.slane %v1411_v46, 2  ;;  %v1430_v55 = vmax.f32 %v1389_v0, %v1390_v25  ;;  %v1388_v42 = vadd.f32 %v2779_v33, %v1370_v48 }
 0x145   :  { %v1375_v18 = vadd.f32 %v1886_v50, %v1139_v43  ;;  %v1346_v34 = vpop.f32.mrf.mxu0  ;;  %v1507_v7 = vsel %vm1506_vm14, %v1505_v1, %v1466_v19 }
 0x146   :  { %v1421_v9 = vrot.slane %v1420_v51, 1  ;;  %v1413_v31 = vmax.f32 %v1411_v46, %v1412_v26  ;;  %v1431_v40 = vrot.slane %v1430_v55, 4  ;;  %v1423_v54 = vmax.f32 %v1387_v24, %v1388_v42 }
 0x147   :  { %v1373_v28 = vadd.f32 %v1346_v34, %v1137_v11  ;;  %v1887_v6 = vpop.f32.mrf.mxu0  ;;  %v1393_v41 = vadd.f32 %v2774_v5, %v1375_v18 }
 0x148   :  { %v1422_v15 = vmax.f32 %v1420_v51, %v1421_v9  ;;  %v1414_v27 = vrot.slane %v1413_v31, 1  ;;  %v1376_v38 = vadd.f32 %v1887_v6, %v1140_v2  ;;  %v1432_v49 = vmax.f32 %v1430_v55, %v1431_v40 }
 0x149   :  { %v1424_v32 = vrot.slane %v1423_v54, 4  ;;  %v1349_v56 = vpop.f32.mrf.mxu0  ;;  %v1391_v52 = vadd.f32 %v2774_v5, %v1373_v28 }
 0x14a   :  { %v1461_v60 = vadd.f32 %v2824_v58, %v1422_v15  ;;  %v1415_v14 = vmax.f32 %v1413_v31, %v1414_v27  ;;  %v1394_v36 = vadd.f32 %v2779_v33, %v1376_v38  ;;  %v1374_v29 = vadd.f32 %v1349_v56, %v1138_v53 }
 0x14b   :  { %v1433_v61 = vrot.slane %v1432_v49, 2  ;;  %v1425_v16 = vmax.f32 %v1423_v54, %v1424_v32  ;;  %v1720_v54 = vld [vmem:[%s2854_s5] ss:$0 sm:$0xff] }
 0x14c   :  { %v1460_v17 = vadd.f32 %v2824_v58, %v1415_v14  ;;  %v1444_v35 = vmax.f32 %v1393_v41, %v1394_v36  ;;  %v1392_v62 = vadd.f32 %v2779_v33, %v1374_v29  ;;  %v1469_v21 = vmax.f32 %v1461_v60, 0.0 }
 0x14d   :  { %v1434_v13 = vmax.f32 %v1432_v49, %v1433_v61  ;;  %v1426_v20 = vrot.slane %v1425_v16, 2 }
 0x14e   :  { %v1468_v37 = vmax.f32 %v1460_v17, 0.0  ;;  %v1445_v4 = vrot.slane %v1444_v35, 4  ;;  %v1437_v22 = vmax.f32 %v1391_v52, %v1392_v62  ;;  %v1511_v11 = vrot.slane %v1469_v21, 5 }
 0x14f   :  { %v1435_v8 = vrot.slane %v1434_v13, 1  ;;  %v1427_v63 = vmax.f32 %v1425_v16, %v1426_v20 }
 0x150   :  { %v1508_v44 = vrot.slane %v1468_v37, 6  ;;  %v1446_v10 = vmax.f32 %v1444_v35, %v1445_v4  ;;  %v1438_v43 = vrot.slane %v1437_v22, 4 }
 0x151   :  { %v1428_v47 = vrot.slane %v1427_v63, 1  ;;  %v1436_v23 = vmax.f32 %v1434_v13, %v1435_v8 }
 0x152   :  { %v1447_v30 = vrot.slane %v1446_v10, 2  ;;  %v1439_v5 = vmax.f32 %v1437_v22, %v1438_v43  ;;  %v1510_v39 = vsel %vm1509_vm15, %v1508_v44, %v1507_v7 }
 0x153   :  { %v1429_v33 = vmax.f32 %v1427_v63, %v1428_v47  ;;  %v1513_v57 = vsel %vm1512_vm0, %v1511_v11, %v1510_v39  ;;  %v1463_v48 = vadd.f32 %v2824_v58, %v1436_v23 }
 0x154   :  { %v1448_v59 = vmax.f32 %v1446_v10, %v1447_v30  ;;  %v1440_v46 = vrot.slane %v1439_v5, 2 }
 0x155   :  { %v1462_v2 = vadd.f32 %v2824_v58, %v1429_v33  ;;  %v1471_v24 = vmax.f32 %v1463_v48, 0.0 }
 0x156   :  { %v1449_v0 = vrot.slane %v1448_v59, 1  ;;  %v1441_v25 = vmax.f32 %v1439_v5, %v1440_v46 }
 0x157   :  { %v1470_v50 = vmax.f32 %v1462_v2, 0.0  ;;  %v1517_v1 = vrot.slane %v1471_v24, 3 }
 0x158   :  { %v1450_v45 = vmax.f32 %v1448_v59, %v1449_v0  ;;  %v1442_v12 = vrot.slane %v1441_v25, 1 }
 0x159   :  { %v1514_v51 = vrot.slane %v1470_v50, 4 }
 0x15a   :  { %v1443_v3 = vmax.f32 %v1441_v25, %v1442_v12  ;;  %v1465_v26 = vadd.f32 %v2824_v58, %v1450_v45 }
 0x15b   :  { %v1516_v34 = vsel %vm1515_vm1, %v1514_v51, %v1513_v57 }
 0x15c   :  { %v1464_v55 = vadd.f32 %v2824_v58, %v1443_v3  ;;  %v1473_v42 = vmax.f32 %v1465_v26, 0.0  ;;  %v1519_v9 = vsel %vm1518_vm2, %v1517_v1, %v1516_v34 }
 0x15e   :  { %v1472_v18 = vmax.f32 %v1464_v55, 0.0  ;;  %v1523_v31 = vrot.slane %v1473_v42, 1 }
 0x160   :  { %v1520_v19 = vrot.slane %v1472_v18, 2 }
 0x162   :  { %v1522_v53 = vsel %vm1521_vm3, %v1520_v19, %v1519_v9 }
 0x163   :  { %v1525_v40 = vsel %vm1524_vm4, %v1523_v31, %v1522_v53 }
 0x164   :  { %1921 = vmatmul.mubr.f32.vlgmr.msra.gmra.mxu1 %v1525_v40 }
 0x224   :  { %v1593_v58 = vpop.f32.mrf.mxu1 }
 0x225   :  { %v1594_v28 = vadd.f32 %v1720_v54, %v1593_v58 }
 0x226   :  { %v1922_v6 = vpop.f32.mrf.mxu1 }
 0x227   :  { %1597 = vst [vmem:[#allocation5] sm:$0xff] %v1594_v28 }
 0x228   :  { %1982 = shalt.err (!%p1979_p9)
}
 0x229   :  { %1607 = dma.vmem_to_hbm [thread:$0]  %s1605_s12, 128, %s2855_s6, [#allocation4]  }
 0x22a   :  { %1993 = dma.done.wait [#allocation4], 128  }
 0x22b   :  { %1994 = vsyncadd [#allocation4], 4294967168 }
 0x22c   :  { %1611 = vsyncpa [#allocation3], 1 }
 0x22d   :  { %1612 = vsyncpa [#allocation4], 1 }

</bundles_post_ra>
